<compile_context>
chip_gen: v7x
topology: tpu7x:2x2x1
jax: 0.10.0
libtpu: 0.0.40
codegen_flags: <defaults>
</compile_context>

<pallas_src>
import jax
import jax.numpy as jnp
from jax.experimental import pallas as pl
from jax.experimental.pallas import tpu as pltpu


def _round_up(x, m):
    return (x + m - 1) // m * m


def _embedding_kernel(idx_ref, table_ref, out_ref):
    # idx_ref:   (1, tile_n)      int32   -- event ids, lane-dense
    # table_ref: (v_pad, d_pad)   float32 -- padded table (row 0 == PAD == 0)
    # out_ref:   (tile_n, d_pad)  float32
    idx = idx_ref[...]                                      # (1, tile_n)
    v_pad = table_ref.shape[0]
    tile_n = idx.shape[1]

    # one_hot_t[v, t] = (v == idx[0, t]); built transposed so the lane-dense
    # id vector only needs a cheap sublane broadcast, no transpose.
    iota_v = jax.lax.broadcasted_iota(jnp.int32, (v_pad, tile_n), 0)
    one_hot_t = (iota_v == idx).astype(table_ref.dtype)     # (v_pad, tile_n)

    # out[t, d] = sum_v one_hot_t[v, t] * table[v, d]  (exact gather on MXU;
    # contraction on dim 0 of both operands).
    out_ref[...] = jax.lax.dot_general(
        one_hot_t,
        table_ref[...],
        dimension_numbers=(((0,), (0,)), ((), ())),
        preferred_element_type=jnp.float32,
    ).astype(out_ref.dtype)


def _table_spec(v_pad, d_pad):
    index_map = lambda i: (0, 0)
    try:
        # Table block index is constant across the grid -> single-buffer it.
        return pl.BlockSpec((v_pad, d_pad), index_map,
                            pipeline_mode=pl.Buffered(1))
    except Exception:
        # Older Pallas without pipeline_mode / Buffered: default (double-
        # buffered) spec; still only DMA'd once since the block never changes.
        return pl.BlockSpec((v_pad, d_pad), index_map)


def event_encoder_forward(event, emb_table, *, tile_n=256):
    """event: int array (B, S); emb_table: (num_types+1, d_model) float32.

    Returns (B, S, d_model), matching nn.Embedding(..., padding_idx=0) given
    that row 0 of `emb_table` is zero.
    """
    B, S = event.shape
    V, d_model = emb_table.shape
    N = B * S

    # Lane-/sublane-friendly sizes.
    tile_n = max(128, _round_up(tile_n, 128))   # sweepable; 256 default
    d_pad = _round_up(d_model, 128)             # lane-dense output / MXU N dim
    v_pad = _round_up(V, 8)                     # sublane-aligned contraction dim
    n_pad = _round_up(N, tile_n)                # no divisibility assert

    # Padded table: extra rows/cols are zero (PAD row 0 is already zero).
    table = jnp.zeros((v_pad, d_pad), emb_table.dtype)
    table = table.at[:V, :d_model].set(emb_table)

    # Lane-dense id stream; padded positions get PAD (=0) ids -> zero rows.
    idx = jnp.zeros((1, n_pad), jnp.int32)
    idx = idx.at[0, :N].set(event.astype(jnp.int32).reshape(N))

    grid = (n_pad // tile_n,)

    # Explicit VMEM budget (table worst-case double-buffered + idx/out double
    # buffers + one-hot temp + headroom), capped at 32 MiB (safe on all chips,
    # incl. v7x's 64 MiB physical VMEM).
    table_bytes = 2 * v_pad * d_pad * 4
    idx_bytes = 2 * 8 * tile_n * 4        # (1, tile_n) pads to 8 sublanes
    out_bytes = 2 * tile_n * d_pad * 4
    onehot_bytes = v_pad * tile_n * 4
    est = table_bytes + idx_bytes + out_bytes + onehot_bytes + (4 << 20)
    vmem_limit = int(min(max(est, 16 << 20), 32 << 20))

    out = pl.pallas_call(
        _embedding_kernel,
        out_shape=jax.ShapeDtypeStruct((n_pad, d_pad), emb_table.dtype),
        grid_spec=pltpu.PrefetchScalarGridSpec(
            num_scalar_prefetch=0,
            grid=grid,
            in_specs=[
                pl.BlockSpec((1, tile_n), lambda i: (0, i)),  # ids, lane-dense
                _table_spec(v_pad, d_pad),                    # resident table
            ],
            out_specs=pl.BlockSpec((tile_n, d_pad), lambda i: (i, 0)),
        ),
        compiler_params=pltpu.CompilerParams(
            dimension_semantics=("parallel",),
            vmem_limit_bytes=vmem_limit,
        ),
    )(idx, table)

    return out[:N, :d_model].reshape(B, S, d_model)


def make_event_encoder_params(key, d_model, num_types):
    """Deterministic synthetic init matching nn.Embedding(num_types+1, d_model,
    padding_idx=0): N(0,1) weights with row 0 zeroed."""
    w = jax.random.normal(key, (num_types + 1, d_model), dtype=jnp.float32)
    w = w.at[0].set(0.0)  # padding_idx = 0
    return w


if __name__ == "__main__":
    d_model = 32
    num_types = 4
    B, S = 2, 8

    key = jax.random.PRNGKey(0)
    k_w, k_e = jax.random.split(key)

    emb_table = make_event_encoder_params(k_w, d_model, num_types)
    # event ids in [0, num_types], 0 is PAD
    event = jax.random.randint(k_e, (B, S), 0, num_types + 1, dtype=jnp.int32)

    out = event_encoder_forward(event, emb_table)
    out = jax.block_until_ready(out)

    # correctness check against plain-JAX reference (embedding gather)
    ref = jnp.take(emb_table, event, axis=0)
    assert out.shape == (B, S, d_model)
    assert jnp.allclose(out, ref, atol=1e-6), "mismatch vs reference gather"
    # PAD rows must be exactly zero
    assert jnp.all(jnp.where(event[..., None] == 0, out, 0.0) == 0.0)

    print("KERNEL_OK")
</pallas_src>

<mosaic_0001>
module attributes {stable_mosaic.version = 11 : i64} {
  func.func @_embedding_kernel(%arg0: i32, %arg1: memref<1x256xi32, #tpu.memory_space<vmem>>, %arg2: memref<8x128xf32, #tpu.memory_space<vmem>>, %arg3: memref<256x128xf32, #tpu.memory_space<vmem>>) attributes {dimension_semantics = [#tpu.dimension_semantics<parallel>], iteration_bounds = array<i64: 1>, scalar_prefetch = 0 : i64, scratch_operands = 0 : i64, tpu.core_type = #tpu.core_type<tc>, window_params = [{transform_indices = @transform_0, window_bounds = array<i64: 1, 256>}, {pipeline_mode = #tpu.pipeline_mode<synchronous>, transform_indices = @transform_1, window_bounds = array<i64: 8, 128>}, {transform_indices = @transform_2, window_bounds = array<i64: 256, 128>}]} {
    %c0 = arith.constant 0 : index
    %c0_0 = arith.constant 0 : index
    %0 = vector.load %arg1[%c0, %c0_0] : memref<1x256xi32, #tpu.memory_space<vmem>>, vector<1x256xi32>
    %1 = tpu.iota {dimensions = array<i32: 0>} : vector<8x256xi32>
    %2 = vector.broadcast %0 : vector<1x256xi32> to vector<8x256xi32>
    %3 = arith.cmpi eq, %1, %2 : vector<8x256xi32>
    %4 = arith.extui %3 : vector<8x256xi1> to vector<8x256xi32>
    %5 = arith.sitofp %4 : vector<8x256xi32> to vector<8x256xf32>
    %c0_1 = arith.constant 0 : index
    %c0_2 = arith.constant 0 : index
    %6 = vector.load %arg2[%c0_1, %c0_2] : memref<8x128xf32, #tpu.memory_space<vmem>>, vector<8x128xf32>
    %cst = arith.constant dense<0.000000e+00> : vector<256x128xf32>
    %7 = tpu.matmul %5, %6, %cst {dimension_numbers = #tpu.dot_dimension_numbers<[0], [0], [1], [1], [0, 1, 1, 1], [], []>} : vector<8x256xf32>, vector<8x128xf32>, vector<256x128xf32> -> vector<256x128xf32>
    %c0_3 = arith.constant 0 : index
    %c0_4 = arith.constant 0 : index
    %8 = vector.load %arg3[%c0_3, %c0_4] : memref<256x128xf32, #tpu.memory_space<vmem>>, vector<256x128xf32>
    tpu.vector_store %arg3[%c0_3, %c0_4], %7 {strides = array<i32>} : memref<256x128xf32, #tpu.memory_space<vmem>>, vector<256x128xf32>,
    return
  }
  func.func @transform_0(%arg0: i32) -> (i32, i32) {
    %c0_i32 = arith.constant 0 : i32
    %c0_i32_0 = arith.constant 0 : i32
    return %c0_i32, %arg0 : i32, i32
  }
  func.func @transform_1(%arg0: i32) -> (i32, i32) {
    %c0_i32 = arith.constant 0 : i32
    %c0_i32_0 = arith.constant 0 : i32
    %c0_i32_1 = arith.constant 0 : i32
    return %c0_i32, %c0_i32_0 : i32, i32
  }
  func.func @transform_2(%arg0: i32) -> (i32, i32) {
    %c0_i32 = arith.constant 0 : i32
    %c0_i32_0 = arith.constant 0 : i32
    return %arg0, %c0_i32 : i32, i32
  }
}

</mosaic_0001>

<bundles_post_ra>
// kernel: tpu_custom_call.1
= control target key start
LH: loop header
LB: loop body
LE: loop exit
PB: predicated region body
PF: predicated region fallthrough
CT: control target
= control target key end

     0   :  { %7 = vsyncpa [#allocation3], 0  ;;  %s858_s0 = inlined_call_operand.hbm [shape: s32[1,256], index: 0, kind: input, shape index: {}]   ;;  %s859_s1 = inlined_call_operand.hbm [shape: f32[8,128], index: 1, kind: input, shape index: {}]   ;;  %s860_s2 = inlined_call_operand.hbm [shape: f32[256,128], index: 2, kind: output, shape index: {}]  }
   0x1   :  { %8 = vsyncpa [#allocation6], 0 }
   0x2   :  { %9 = vsyncpa [#allocation4], 0  ;;  %s769_s9 = smov [#allocation2]   ;;  %s770_s11 = smov [#allocation5]  }
   0x3   :  { %s16_s10 = sshll.u32 %s769_s9, 4  ;;  %s26_s12 = sshll.u32 %s770_s11, 4  ;;  %s17_s10 = int_to_ptr.vmem [resolvable:$true] %s16_s10  ;;  %s27_s12 = int_to_ptr.vmem [resolvable:$true] %s26_s12 }
   0x4   :  { %s697_s15 = scalar_lea.hbm %s858_s0, 32 }
   0x5   :  { %p698_p0 = scmp.ne.s32.totalorder %s858_s0, %s697_s15  ;;  %p701_p1 = scmp.lt.u32.totalorder %s697_s15, %s858_s0 }
   0x7   :  { %p703_p2 = pnand %p701_p1, %p698_p0 }
   0x9   :  { %706 = shalt.err (!%p703_p2)
}
   0xa   :  { %s707_s20 = scalar_lea.vmem %s17_s10, 32  ;;  %p712_p4 = scmp.lt.s32.totalorder %s17_s10, %s17_s10 }
   0xb   :  { %p708_p3 = scmp.ne.s32.totalorder %s17_s10, %s707_s20  ;;  %p713_p5 = scmp.lt.s32.totalorder %s707_s20, %s707_s20 }
   0xd   :  { %p714_p6 = por %p713_p5, %p712_p4 }
   0xf   :  { %p715_p7 = pnand %p714_p6, %p708_p3 }
  0x11   :  { %718 = shalt.err (!%p715_p7)
}
  0x12   :  { %19 = dma.hbm_to_vmem [thread:$0]  %s858_s0, 32, %s17_s10, [#allocation3]  }
  0x13   :  { %s719_s25 = scalar_lea.hbm %s859_s1, 128 }
  0x14   :  { %p720_p8 = scmp.ne.s32.totalorder %s859_s1, %s719_s25  ;;  %p723_p9 = scmp.lt.u32.totalorder %s719_s25, %s859_s1 }
  0x16   :  { %p725_p10 = pnand %p723_p9, %p720_p8 }
  0x18   :  { %728 = shalt.err (!%p725_p10)
}
  0x19   :  { %s729_s30 = scalar_lea.vmem %s27_s12, 128  ;;  %p734_p12 = scmp.lt.s32.totalorder %s27_s12, %s27_s12 }
  0x1a   :  { %p730_p11 = scmp.ne.s32.totalorder %s27_s12, %s729_s30  ;;  %p735_p13 = scmp.lt.s32.totalorder %s729_s30, %s729_s30 }
  0x1c   :  { %p736_p0 = por %p735_p13, %p734_p12 }
  0x1e   :  { %p737_p1 = pnand %p736_p0, %p730_p11 }
  0x20   :  { %740 = shalt.err (!%p737_p1)
}
  0x21   :  { %29 = dma.hbm_to_vmem [thread:$0]  %s859_s1, 128, %s27_s12, [#allocation6]  }
  0x22   :  { %763 = dma.done.wait [#allocation3], 32  }
  0x23   :  { %764 = vsyncadd [#allocation3], 4294967264 }
  0x24   :  { %765 = dma.done.wait [#allocation6], 128  }
  0x25   :  { %766 = vsyncadd [#allocation6], 4294967168  ;;  %v37_v0 = vlaneseq  ;;  %v36_v4 = vld [vmem:[#allocation2] sm:$0x3]  ;;  %v771_v7 = vmov 0.0   ;;  %v53_v11 = vld [vmem:[#allocation5] sm:$0xff] }
  0x26   :  { %557 = vmatprep.subr.mxu0 %v53_v11  ;;  %607 = vmatprep.subr.mxu1 %v53_v11  ;;  %vm118_vm2 = vcmask 64512   ;;  %s772_s1 = smov [#allocation7]  }
  0x27   :  { %v38_v1 = vshrl.u32 %v37_v0, 7  ;;  %558 = vmatpush3.msra.mxu0 %v53_v11  ;;  %608 = vmatpush3.msra.mxu1 %v53_v11  ;;  %s477_s4 = sshll.u32 %s772_s1, 4  ;;  %s478_s4 = int_to_ptr.vmem [resolvable:$true] %s477_s4 }
  0x28   :  { %s741_s5 = scalar_lea.vmem %s478_s4, 4096  ;;  %p746_p3 = scmp.lt.s32.totalorder %s478_s4, %s478_s4 }
  0x29   :  { %v41_v2 = vsub.s32 0, %v38_v1  ;;  %v45_v3 = vsub.s32 1, %v38_v1  ;;  %p742_p2 = scmp.ne.s32.totalorder %s478_s4, %s741_s5  ;;  %p747_p4 = scmp.lt.s32.totalorder %s741_s5, %s741_s5 }
  0x2b   :  { %v42_v5 = vrot.slane %v36_v4, %v41_v2  ;;  %v46_v6 = vrot.slane %v36_v4, %v45_v3  ;;  %p748_p5 = por %p747_p4, %p746_p3 }
  0x2d   :  { %vm47_vm0 = vcmp.eq.s32.totalorder %v38_v1, %v42_v5  ;;  %vm48_vm1 = vcmp.eq.s32.totalorder %v38_v1, %v46_v6  ;;  %p749_p6 = pnand %p748_p5, %p742_p2 }
  0x2e   :  { %v490_v8 = vsel %vm47_vm0, 1.0, %v771_v7  ;;  %v491_v9 = vsel %vm48_vm1, 1.0, %v771_v7 }
  0x2f   :  { %v615_v10 = vpack.i.bf16 %v491_v9, %v490_v8 }
  0x31   :  { %616 = vxpose.xlu0.b32.start.end [1/1] (short) %v615_v10, 128 }
  0xb1   :  { %v617_v12 = vpop.trf.xlu0 }
  0xb2   :  { %v618_v13 = vunpack.i.l.bf16 %v617_v12  ;;  %v621_v14 = vunpack.i.h.bf16 %v617_v12 }
  0xb4   :  { %559 = vmatprep.mubr.msk.f32.mxu0 %vm118_vm2, %v618_v13  ;;  %583 = vmatprep.mubr.msk.f32.mxu1 %vm118_vm2, %v621_v14 }
  0xb5   :  { %v622_v15 = vpop.trf.xlu0 }
  0xb6   :  { %v626_v16 = vunpack.i.h.bf16 %v622_v15  ;;  %v623_v17 = vunpack.i.l.bf16 %v622_v15 }
  0xb8   :  { %560 = vmatmul.mubr.msk.f32.vlgmr.msra.gmra.mrb[0].mxu0 %vm118_vm2, %v623_v17  ;;  %584 = vmatmul.mubr.msk.f32.vlgmr.msra.gmra.mrb[0].mxu1 %vm118_vm2, %v626_v16 }
  0xb9   :  { %v627_v18 = vpop.trf.xlu0 }
  0xba   :  { %v631_v19 = vunpack.i.h.bf16 %v627_v18  ;;  %v628_v20 = vunpack.i.l.bf16 %v627_v18 }
  0xbc   :  { %562 = vmatprep.mubr.msk.f32.mxu0 %vm118_vm2, %v628_v20  ;;  %586 = vmatprep.mubr.msk.f32.mxu1 %vm118_vm2, %v631_v19 }
  0xbd   :  { %v632_v21 = vpop.trf.xlu0 }
  0xbe   :  { %v636_v22 = vunpack.i.h.bf16 %v632_v21  ;;  %v633_v23 = vunpack.i.l.bf16 %v632_v21 }
  0xc0   :  { %563 = vmatmul.mubr.msk.f32.gmra.mrb[2].mxu0 %vm118_vm2, %v633_v23  ;;  %587 = vmatmul.mubr.msk.f32.gmra.mrb[2].mxu1 %vm118_vm2, %v636_v22 }
  0xc1   :  { %v637_v24 = vpop.trf.xlu0 }
  0xc2   :  { %v641_v25 = vunpack.i.h.bf16 %v637_v24  ;;  %v638_v26 = vunpack.i.l.bf16 %v637_v24 }
  0xc4   :  { %565 = vmatprep.mubr.msk.f32.mxu0 %vm118_vm2, %v638_v26  ;;  %589 = vmatprep.mubr.msk.f32.mxu1 %vm118_vm2, %v641_v25 }
  0xc5   :  { %v642_v27 = vpop.trf.xlu0 }
  0xc6   :  { %v646_v28 = vunpack.i.h.bf16 %v642_v27  ;;  %v643_v29 = vunpack.i.l.bf16 %v642_v27 }
  0xc8   :  { %566 = vmatmul.mubr.msk.f32.gmra.mrb[4].mxu0 %vm118_vm2, %v643_v29  ;;  %590 = vmatmul.mubr.msk.f32.gmra.mrb[4].mxu1 %vm118_vm2, %v646_v28 }
  0xc9   :  { %v647_v30 = vpop.trf.xlu0 }
  0xca   :  { %v651_v31 = vunpack.i.h.bf16 %v647_v30  ;;  %v648_v32 = vunpack.i.l.bf16 %v647_v30 }
  0xcc   :  { %568 = vmatprep.mubr.msk.f32.mxu0 %vm118_vm2, %v648_v32  ;;  %592 = vmatprep.mubr.msk.f32.mxu1 %vm118_vm2, %v651_v31 }
  0xcd   :  { %v652_v33 = vpop.trf.xlu0 }
  0xce   :  { %v656_v34 = vunpack.i.h.bf16 %v652_v33  ;;  %v653_v35 = vunpack.i.l.bf16 %v652_v33 }
  0xd0   :  { %569 = vmatmul.mubr.msk.f32.gmra.mrb[6].mxu0 %vm118_vm2, %v653_v35  ;;  %593 = vmatmul.mubr.msk.f32.gmra.mrb[6].mxu1 %vm118_vm2, %v656_v34 }
  0xd1   :  { %v657_v36 = vpop.trf.xlu0 }
  0xd2   :  { %v661_v37 = vunpack.i.h.bf16 %v657_v36  ;;  %v658_v38 = vunpack.i.l.bf16 %v657_v36 }
  0xd4   :  { %571 = vmatprep.mubr.msk.f32.mxu0 %vm118_vm2, %v658_v38  ;;  %595 = vmatprep.mubr.msk.f32.mxu1 %vm118_vm2, %v661_v37 }
  0xd5   :  { %v662_v39 = vpop.trf.xlu0 }
  0xd6   :  { %v666_v40 = vunpack.i.h.bf16 %v662_v39  ;;  %v663_v41 = vunpack.i.l.bf16 %v662_v39 }
  0xd8   :  { %572 = vmatmul.mubr.msk.f32.gmra.mrb[8].mxu0 %vm118_vm2, %v663_v41  ;;  %596 = vmatmul.mubr.msk.f32.gmra.mrb[8].mxu1 %vm118_vm2, %v666_v40 }
  0xd9   :  { %v667_v42 = vpop.trf.xlu0 }
  0xda   :  { %v671_v43 = vunpack.i.h.bf16 %v667_v42  ;;  %v668_v44 = vunpack.i.l.bf16 %v667_v42 }
  0xdc   :  { %574 = vmatprep.mubr.msk.f32.mxu0 %vm118_vm2, %v668_v44  ;;  %598 = vmatprep.mubr.msk.f32.mxu1 %vm118_vm2, %v671_v43 }
  0xdd   :  { %v672_v45 = vpop.trf.xlu0 }
  0xde   :  { %v676_v46 = vunpack.i.h.bf16 %v672_v45  ;;  %v673_v47 = vunpack.i.l.bf16 %v672_v45 }
  0xe0   :  { %575 = vmatmul.mubr.msk.f32.gmra.mrb[10].mxu0 %vm118_vm2, %v673_v47  ;;  %599 = vmatmul.mubr.msk.f32.gmra.mrb[10].mxu1 %vm118_vm2, %v676_v46 }
  0xe1   :  { %v677_v48 = vpop.trf.xlu0 }
  0xe2   :  { %v681_v49 = vunpack.i.h.bf16 %v677_v48  ;;  %v678_v50 = vunpack.i.l.bf16 %v677_v48 }
  0xe4   :  { %577 = vmatprep.mubr.msk.f32.mxu0 %vm118_vm2, %v678_v50  ;;  %601 = vmatprep.mubr.msk.f32.mxu1 %vm118_vm2, %v681_v49 }
  0xe5   :  { %v682_v51 = vpop.trf.xlu0 }
  0xe6   :  { %v686_v52 = vunpack.i.h.bf16 %v682_v51  ;;  %v683_v53 = vunpack.i.l.bf16 %v682_v51 }
  0xe8   :  { %578 = vmatmul.mubr.msk.f32.gmra.mrb[12].mxu0 %vm118_vm2, %v683_v53  ;;  %602 = vmatmul.mubr.msk.f32.gmra.mrb[12].mxu1 %vm118_vm2, %v686_v52 }
  0xe9   :  { %v687_v54 = vpop.trf.xlu0 }
  0xea   :  { %v691_v55 = vunpack.i.h.bf16 %v687_v54  ;;  %v688_v56 = vunpack.i.l.bf16 %v687_v54 }
  0xec   :  { %580 = vmatprep.mubr.msk.f32.mxu0 %vm118_vm2, %v688_v56  ;;  %604 = vmatprep.mubr.msk.f32.mxu1 %vm118_vm2, %v691_v55 }
  0xed   :  { %v692_v57 = vpop.trf.xlu0 }
  0xee   :  { %v696_v58 = vunpack.i.h.bf16 %v692_v57  ;;  %v693_v59 = vunpack.i.l.bf16 %v692_v57 }
  0xf0   :  { %581 = vmatmul.mubr.msk.f32.gmra.mrb[14].mxu0 %vm118_vm2, %v693_v59  ;;  %605 = vmatmul.mubr.msk.f32.gmra.mrb[14].mxu1 %vm118_vm2, %v696_v58 }
 0x18b   :  { %v561_v60 = vpop.f32.mrb[0].mxu0  ;;  %v585_v61 = vpop.f32.mrb[0].mxu1 }
 0x18c   :  { %441 = vst [vmem:[#allocation7 + $0x8] sm:$0xff] %v561_v60  ;;  %457 = vst [vmem:[#allocation7 + $0x88] sm:$0xff] %v585_v61  ;;  %v281_v62 = vpop.f32.mrb[1].mxu0  ;;  %v361_v63 = vpop.f32.mrb[1].mxu1 }
 0x18d   :  { %440 = vst [vmem:[#allocation7] sm:$0xff] %v281_v62  ;;  %456 = vst [vmem:[#allocation7 + $0x80] sm:$0xff] %v361_v63 }
 0x193   :  { %v564_v0 = vpop.f32.mrb[2].mxu0  ;;  %v588_v1 = vpop.f32.mrb[2].mxu1 }
 0x194   :  { %443 = vst [vmem:[#allocation7 + $0x18] sm:$0xff] %v564_v0  ;;  %459 = vst [vmem:[#allocation7 + $0x98] sm:$0xff] %v588_v1  ;;  %v291_v2 = vpop.f32.mrb[3].mxu0  ;;  %v371_v3 = vpop.f32.mrb[3].mxu1 }
 0x195   :  { %442 = vst [vmem:[#allocation7 + $0x10] sm:$0xff] %v291_v2  ;;  %458 = vst [vmem:[#allocation7 + $0x90] sm:$0xff] %v371_v3 }
 0x19b   :  { %v567_v4 = vpop.f32.mrb[4].mxu0  ;;  %v591_v5 = vpop.f32.mrb[4].mxu1 }
 0x19c   :  { %445 = vst [vmem:[#allocation7 + $0x28] sm:$0xff] %v567_v4  ;;  %461 = vst [vmem:[#allocation7 + $0xa8] sm:$0xff] %v591_v5  ;;  %v301_v6 = vpop.f32.mrb[5].mxu0  ;;  %v381_v7 = vpop.f32.mrb[5].mxu1 }
 0x19d   :  { %444 = vst [vmem:[#allocation7 + $0x20] sm:$0xff] %v301_v6  ;;  %460 = vst [vmem:[#allocation7 + $0xa0] sm:$0xff] %v381_v7 }
 0x1a3   :  { %v570_v8 = vpop.f32.mrb[6].mxu0  ;;  %v594_v9 = vpop.f32.mrb[6].mxu1 }
 0x1a4   :  { %447 = vst [vmem:[#allocation7 + $0x38] sm:$0xff] %v570_v8  ;;  %463 = vst [vmem:[#allocation7 + $0xb8] sm:$0xff] %v594_v9  ;;  %v311_v10 = vpop.f32.mrb[7].mxu0  ;;  %v391_v11 = vpop.f32.mrb[7].mxu1 }
 0x1a5   :  { %446 = vst [vmem:[#allocation7 + $0x30] sm:$0xff] %v311_v10  ;;  %462 = vst [vmem:[#allocation7 + $0xb0] sm:$0xff] %v391_v11 }
 0x1ab   :  { %v573_v12 = vpop.f32.mrb[8].mxu0  ;;  %v597_v13 = vpop.f32.mrb[8].mxu1 }
 0x1ac   :  { %449 = vst [vmem:[#allocation7 + $0x48] sm:$0xff] %v573_v12  ;;  %465 = vst [vmem:[#allocation7 + $0xc8] sm:$0xff] %v597_v13  ;;  %v321_v14 = vpop.f32.mrb[9].mxu0  ;;  %v401_v15 = vpop.f32.mrb[9].mxu1 }
 0x1ad   :  { %448 = vst [vmem:[#allocation7 + $0x40] sm:$0xff] %v321_v14  ;;  %464 = vst [vmem:[#allocation7 + $0xc0] sm:$0xff] %v401_v15 }
 0x1b3   :  { %v576_v16 = vpop.f32.mrb[10].mxu0  ;;  %v600_v17 = vpop.f32.mrb[10].mxu1 }
 0x1b4   :  { %451 = vst [vmem:[#allocation7 + $0x58] sm:$0xff] %v576_v16  ;;  %467 = vst [vmem:[#allocation7 + $0xd8] sm:$0xff] %v600_v17  ;;  %v331_v18 = vpop.f32.mrb[11].mxu0  ;;  %v411_v19 = vpop.f32.mrb[11].mxu1 }
 0x1b5   :  { %450 = vst [vmem:[#allocation7 + $0x50] sm:$0xff] %v331_v18  ;;  %466 = vst [vmem:[#allocation7 + $0xd0] sm:$0xff] %v411_v19 }
 0x1bb   :  { %v579_v20 = vpop.f32.mrb[12].mxu0  ;;  %v603_v21 = vpop.f32.mrb[12].mxu1 }
 0x1bc   :  { %453 = vst [vmem:[#allocation7 + $0x68] sm:$0xff] %v579_v20  ;;  %469 = vst [vmem:[#allocation7 + $0xe8] sm:$0xff] %v603_v21  ;;  %v341_v22 = vpop.f32.mrb[13].mxu0  ;;  %v421_v23 = vpop.f32.mrb[13].mxu1 }
 0x1bd   :  { %452 = vst [vmem:[#allocation7 + $0x60] sm:$0xff] %v341_v22  ;;  %468 = vst [vmem:[#allocation7 + $0xe0] sm:$0xff] %v421_v23 }
 0x1c3   :  { %v582_v24 = vpop.f32.mrb[14].mxu0  ;;  %v606_v25 = vpop.f32.mrb[14].mxu1 }
 0x1c4   :  { %455 = vst [vmem:[#allocation7 + $0x78] sm:$0xff] %v582_v24  ;;  %471 = vst [vmem:[#allocation7 + $0xf8] sm:$0xff] %v606_v25  ;;  %v351_v26 = vpop.f32.mrb[15].mxu0  ;;  %v431_v27 = vpop.f32.mrb[15].mxu1 }
 0x1c5   :  { %454 = vst [vmem:[#allocation7 + $0x70] sm:$0xff] %v351_v26  ;;  %470 = vst [vmem:[#allocation7 + $0xf0] sm:$0xff] %v431_v27 }
 0x1c6   :  { %752 = shalt.err (!%p749_p6)
}
 0x1c7   :  { %s753_s8 = scalar_lea.hbm %s860_s2, 4096 }
 0x1c8   :  { %p754_p7 = scmp.ne.s32.totalorder %s860_s2, %s753_s8  ;;  %p757_p8 = scmp.lt.u32.totalorder %s753_s8, %s860_s2 }
 0x1ca   :  { %p759_p9 = pnand %p757_p8, %p754_p7 }
 0x1cc   :  { %762 = shalt.err (!%p759_p9)
}
 0x1cd   :  { %s773_s13 = smov 128   ;;  %s774_s14 = smov 8  }
 0x1ce   :  { %483 = dma.vmem_to_hbm [thread:$0]  %s478_s4, 4096, %s860_s2, [#allocation4], %s773_s13, %s773_s13, %s774_s14  }
 0x1cf   :  { %767 = dma.done.wait [#allocation4], 4096  }
 0x1d0   :  { %768 = vsyncadd [#allocation4], 4294963200 }
 0x1d1   :  { %487 = vsyncpa [#allocation3], 1 }
 0x1d2   :  { %488 = vsyncpa [#allocation6], 1 }
 0x1d3   :  { %489 = vsyncpa [#allocation4], 1 }

</bundles_post_ra>
